<compile_context>
chip_gen: v5e
topology: v5e:2x2
jax: 0.10.0
libtpu: 0.0.40
codegen_flags: <defaults>
</compile_context>

<pallas_src>
import jax
import jax.numpy as jnp
from jax.experimental import pallas as pl
from jax.experimental.pallas import tpu as pltpu


def _attn_kernel(x_ref, cw_ref, w1s_ref, b1s_ref, w2s_ref, b2s_ref, o_ref):
    # x_ref block: (1, C, TILE_HW); cw_ref block: (1, C, 1); weights resident.
    x = x_ref[0]                                                  # (C, T)

    # ---- spatial attention branch (per pixel, channels reduced) ----
    # Conv2d(C, Cr, 1) + folded BN, ReLU   ->  (Cr, T), lane-dense result.
    hs = jnp.dot(w1s_ref[...], x, preferred_element_type=jnp.float32) + b1s_ref[...]
    hs = jnp.maximum(hs, 0.0)                                     # (Cr, T)
    # Conv2d(Cr, 1, 1): VPU broadcast-multiply + sublane sum (no N=1 MXU matmul).
    s_logit = jnp.sum(hs * w2s_ref[...], axis=0, keepdims=True) + b2s_ref[...]
    spatial_w = jax.nn.sigmoid(s_logit)                           # (1, T)

    # ---- apply spatial (broadcast over sublanes) and precomputed channel
    # attention (broadcast over lanes) ----
    o_ref[0] = x * spatial_w * cw_ref[0]                          # (C, T)


def _fold_bn(w, b, gamma, beta, mean, var, eps=1e-5):
    """Fold eval-mode BatchNorm (per output channel) into a (Cin,Cout) weight/bias."""
    scale = gamma / jnp.sqrt(var + eps)          # (Cout,)
    w_f = w * scale[None, :]                     # (Cin, Cout)
    b_f = (b - mean) * scale + beta              # (Cout,)
    return w_f, b_f


def _pick_tile_hw(hw, c, budget_bytes=8 * 1024 * 1024):
    """Largest lane tile (multiple of 128 dividing hw) whose 4 double-buffered
    f32 (C, tile) blocks stay within `budget_bytes` (VMEM-safe even on v7x)."""
    max_lanes = max(128, budget_bytes // (4 * 4 * c))
    if hw <= max_lanes:
        return hw
    t = (max_lanes // 128) * 128
    while t >= 128:
        if hw % t == 0:
            return t
        t -= 128
    return hw  # no 128-multiple divisor: fall back to the full map


def growth_stage_attention(x_nchw, params):
    """x_nchw: (B, C, H, W) float32.  Returns (B, C, H, W)."""
    B, C, H, W = x_nchw.shape
    Cr = C // 8
    HW = H * W

    # Free reshape: keep channels-first, flatten spatial onto the lane axis.
    x = x_nchw.reshape(B, C, HW)

    # Fold BN into the first 1x1 conv of each branch (glue, exact in eval mode).
    w1s, b1s = _fold_bn(params["w1s"], params["b1s"],
                        params["bn_s_gamma"], params["bn_s_beta"],
                        params["bn_s_mean"], params["bn_s_var"])
    w1c, b1c = _fold_bn(params["w1c"], params["b1c"],
                        params["bn_c_gamma"], params["bn_c_beta"],
                        params["bn_c_mean"], params["bn_c_var"])

    # ---- channel attention, hoisted out of the main kernel (per perf review):
    # AdaptiveAvgPool2d(1) -> Conv1x1+BN -> ReLU -> Conv1x1 -> Sigmoid.
    # O(B*C*Cr) FLOPs after the pool; computing it up front unlocks HW tiling.
    pooled = jnp.mean(x, axis=-1)                                  # (B, C)
    hc = jnp.maximum(pooled @ w1c + b1c, 0.0)                      # (B, Cr)
    channel_w = jax.nn.sigmoid(hc @ params["w2c"] + params["b2c"]) # (B, C)
    channel_w = channel_w[:, :, None]                              # (B, C, 1)

    # Spatial-branch weights in (C, HW)-layout orientation.
    w1s_t = jnp.transpose(w1s)            # (Cr, C)
    b1s_c = b1s.reshape(Cr, 1)            # (Cr, 1)
    w2s_c = params["w2s"].reshape(Cr, 1)  # (Cr, 1)
    b2s_c = params["b2s"].reshape(1, 1)   # (1, 1)

    tile_hw = _pick_tile_hw(HW, C)
    n_t = HW // tile_hw
    grid = (B, n_t)

    def const_spec(arr):
        nd = arr.ndim
        return pl.BlockSpec(arr.shape, lambda b, t, _nd=nd: (0,) * _nd)

    out = pl.pallas_call(
        _attn_kernel,
        out_shape=jax.ShapeDtypeStruct((B, C, HW), jnp.float32),
        grid_spec=pltpu.PrefetchScalarGridSpec(
            num_scalar_prefetch=0,
            grid=grid,
            in_specs=[
                pl.BlockSpec((1, C, tile_hw), lambda b, t: (b, 0, t)),  # x
                pl.BlockSpec((1, C, 1), lambda b, t: (b, 0, 0)),        # channel_w
                const_spec(w1s_t), const_spec(b1s_c),                   # spatial conv1 (+BN)
                const_spec(w2s_c), const_spec(b2s_c),                   # spatial conv2
            ],
            out_specs=pl.BlockSpec((1, C, tile_hw), lambda b, t: (b, 0, t)),
        ),
        compiler_params=pltpu.CompilerParams(
            dimension_semantics=("parallel", "parallel"),
            vmem_limit_bytes=32 * 1024 * 1024),
    )(x, channel_w, w1s_t, b1s_c, w2s_c, b2s_c)

    return out.reshape(B, C, H, W)


def _reference(x_nchw, params):
    """Pure-JAX reference with identical math (for a correctness check)."""
    B, C, H, W = x_nchw.shape
    xl = jnp.transpose(x_nchw, (0, 2, 3, 1)).reshape(B, H * W, C)

    w1s, b1s = _fold_bn(params["w1s"], params["b1s"],
                        params["bn_s_gamma"], params["bn_s_beta"],
                        params["bn_s_mean"], params["bn_s_var"])
    w1c, b1c = _fold_bn(params["w1c"], params["b1c"],
                        params["bn_c_gamma"], params["bn_c_beta"],
                        params["bn_c_mean"], params["bn_c_var"])

    hs = jnp.maximum(xl @ w1s + b1s, 0.0)
    s = jax.nn.sigmoid(hs @ params["w2s"] + params["b2s"])            # (B, HW, 1)
    pooled = jnp.mean(xl, axis=1)                                     # (B, C)
    hc = jnp.maximum(pooled @ w1c + b1c, 0.0)
    cw = jax.nn.sigmoid(hc @ params["w2c"] + params["b2c"])           # (B, C)
    out = xl * s * cw[:, None, :]
    return jnp.transpose(out.reshape(B, H, W, C), (0, 3, 1, 2))


def make_params(C, key):
    """Deterministic parameter init matching the PyTorch module's shapes.

    PyTorch Conv2d(in, out, 1) weight is (out, in, 1, 1); we store the
    equivalent (in, out) matrix so that a 1x1 conv == x @ W + b.
    """
    Cr = C // 8
    ks = jax.random.split(key, 8)
    p = {
        # spatial_attention: Conv2d(C, Cr, 1) -> BN(Cr) -> ReLU -> Conv2d(Cr, 1, 1) -> Sigmoid
        "w1s": jax.random.normal(ks[0], (C, Cr), jnp.float32) * 0.2,
        "b1s": jax.random.normal(ks[1], (Cr,), jnp.float32) * 0.1,
        "w2s": jax.random.normal(ks[2], (Cr, 1), jnp.float32) * 0.2,
        "b2s": jax.random.normal(ks[3], (1,), jnp.float32) * 0.1,
        "bn_s_gamma": 1.0 + 0.10 * jnp.arange(Cr, dtype=jnp.float32),
        "bn_s_beta": 0.05 * jnp.arange(Cr, dtype=jnp.float32),
        "bn_s_mean": 0.02 * jnp.arange(Cr, dtype=jnp.float32),
        "bn_s_var": 1.0 + 0.03 * jnp.arange(Cr, dtype=jnp.float32),
        # channel_attention: AvgPool -> Conv2d(C, Cr, 1) -> BN(Cr) -> ReLU -> Conv2d(Cr, C, 1) -> Sigmoid
        "w1c": jax.random.normal(ks[4], (C, Cr), jnp.float32) * 0.2,
        "b1c": jax.random.normal(ks[5], (Cr,), jnp.float32) * 0.1,
        "w2c": jax.random.normal(ks[6], (Cr, C), jnp.float32) * 0.2,
        "b2c": jax.random.normal(ks[7], (C,), jnp.float32) * 0.1,
        "bn_c_gamma": 1.0 - 0.05 * jnp.arange(Cr, dtype=jnp.float32),
        "bn_c_beta": -0.03 * jnp.arange(Cr, dtype=jnp.float32),
        "bn_c_mean": 0.01 * jnp.arange(Cr, dtype=jnp.float32),
        "bn_c_var": 1.0 + 0.02 * jnp.arange(Cr, dtype=jnp.float32),
    }
    return p


if __name__ == "__main__":
    B, C, H, W = 2, 16, 16, 16     # in_channels must be a multiple of 8 (C//8 >= 1)
    key = jax.random.PRNGKey(0)
    kx, kp = jax.random.split(key)
    x = jax.random.normal(kx, (B, C, H, W), jnp.float32)
    params = make_params(C, kp)

    out = jax.block_until_ready(growth_stage_attention(x, params))
    ref = jax.block_until_ready(_reference(x, params))

    assert out.shape == (B, C, H, W)
    assert jnp.allclose(out, ref, atol=1e-5, rtol=1e-5), "mismatch vs JAX reference"
    print("KERNEL_OK")
</pallas_src>

<mosaic_0001>
module attributes {stable_mosaic.version = 11 : i64} {
  func.func @_attn_kernel(%arg0: i32, %arg1: i32, %arg2: memref<1x16x256xf32, #tpu.memory_space<vmem>>, %arg3: memref<1x16x1xf32, #tpu.memory_space<vmem>>, %arg4: memref<2x16xf32, #tpu.memory_space<vmem>>, %arg5: memref<2x1xf32, #tpu.memory_space<vmem>>, %arg6: memref<2x1xf32, #tpu.memory_space<vmem>>, %arg7: memref<1x1xf32, #tpu.memory_space<vmem>>, %arg8: memref<1x16x256xf32, #tpu.memory_space<vmem>>) attributes {dimension_semantics = [#tpu.dimension_semantics<parallel>, #tpu.dimension_semantics<parallel>], iteration_bounds = array<i64: 2, 1>, scalar_prefetch = 0 : i64, scratch_operands = 0 : i64, tpu.core_type = #tpu.core_type<tc>, window_params = [{transform_indices = @transform_0, window_bounds = array<i64: 1, 16, 256>}, {transform_indices = @transform_1, window_bounds = array<i64: 1, 16, 1>}, {pipeline_mode = #tpu.pipeline_mode<synchronous>, transform_indices = @transform_2, window_bounds = array<i64: 2, 16>}, {pipeline_mode = #tpu.pipeline_mode<synchronous>, transform_indices = @transform_3, window_bounds = array<i64: 2, 1>}, {pipeline_mode = #tpu.pipeline_mode<synchronous>, transform_indices = @transform_4, window_bounds = array<i64: 2, 1>}, {pipeline_mode = #tpu.pipeline_mode<synchronous>, transform_indices = @transform_5, window_bounds = array<i64: 1, 1>}, {transform_indices = @transform_6, window_bounds = array<i64: 1, 16, 256>}]} {
    %c0 = arith.constant 0 : index
    %c0_0 = arith.constant 0 : index
    %c0_1 = arith.constant 0 : index
    %0 = vector.load %arg2[%c0, %c0_0, %c0_1] : memref<1x16x256xf32, #tpu.memory_space<vmem>>, vector<1x16x256xf32>
    %1 = vector.shape_cast %0 : vector<1x16x256xf32> to vector<16x256xf32>
    %c0_2 = arith.constant 0 : index
    %c0_3 = arith.constant 0 : index
    %2 = vector.load %arg4[%c0_2, %c0_3] : memref<2x16xf32, #tpu.memory_space<vmem>>, vector<2x16xf32>
    %cst = arith.constant dense<0.000000e+00> : vector<2x256xf32>
    %3 = tpu.matmul %2, %1, %cst {dimension_numbers = #tpu.dot_dimension_numbers<[1], [0], [0], [1], [0, 0, 1, 1], [], []>} : vector<2x16xf32>, vector<16x256xf32>, vector<2x256xf32> -> vector<2x256xf32>
    %c0_4 = arith.constant 0 : index
    %c0_5 = arith.constant 0 : index
    %4 = vector.load %arg5[%c0_4, %c0_5] : memref<2x1xf32, #tpu.memory_space<vmem>>, vector<2x1xf32>
    %5 = vector.broadcast %4 : vector<2x1xf32> to vector<2x256xf32>
    %6 = arith.addf %3, %5 : vector<2x256xf32>
    %cst_6 = arith.constant 0.000000e+00 : f32
    %7 = vector.broadcast %cst_6 : f32 to vector<2x256xf32>
    %8 = arith.maximumf %6, %7 : vector<2x256xf32>
    %c0_7 = arith.constant 0 : index
    %c0_8 = arith.constant 0 : index
    %9 = vector.load %arg6[%c0_7, %c0_8] : memref<2x1xf32, #tpu.memory_space<vmem>>, vector<2x1xf32>
    %10 = vector.broadcast %9 : vector<2x1xf32> to vector<2x256xf32>
    %11 = arith.mulf %8, %10 : vector<2x256xf32>
    %cst_9 = arith.constant dense<0.000000e+00> : vector<256xf32>
    %12 = vector.multi_reduction <add>, %11, %cst_9 [0] : vector<2x256xf32> to vector<256xf32>
    %13 = vector.shape_cast %12 : vector<256xf32> to vector<1x256xf32>
    %c0_10 = arith.constant 0 : index
    %c0_11 = arith.constant 0 : index
    %14 = vector.load %arg7[%c0_10, %c0_11] : memref<1x1xf32, #tpu.memory_space<vmem>>, vector<1x1xf32>
    %15 = vector.broadcast %14 : vector<1x1xf32> to vector<1x256xf32>
    %16 = arith.addf %13, %15 : vector<1x256xf32>
    %17 = arith.negf %16 : vector<1x256xf32>
    %18 = math.exp %17 : vector<1x256xf32>
    %cst_12 = arith.constant 1.000000e+00 : f32
    %19 = vector.broadcast %cst_12 : f32 to vector<1x256xf32>
    %20 = arith.addf %19, %18 : vector<1x256xf32>
    %21 = arith.divf %19, %20 : vector<1x256xf32>
    %22 = vector.broadcast %21 : vector<1x256xf32> to vector<16x256xf32>
    %23 = arith.mulf %1, %22 : vector<16x256xf32>
    %c0_13 = arith.constant 0 : index
    %c0_14 = arith.constant 0 : index
    %c0_15 = arith.constant 0 : index
    %24 = vector.load %arg3[%c0_13, %c0_14, %c0_15] : memref<1x16x1xf32, #tpu.memory_space<vmem>>, vector<1x16x1xf32>
    %25 = vector.shape_cast %24 : vector<1x16x1xf32> to vector<16x1xf32>
    %26 = vector.broadcast %25 : vector<16x1xf32> to vector<16x256xf32>
    %27 = arith.mulf %23, %26 : vector<16x256xf32>
    %c0_16 = arith.constant 0 : index
    %c0_17 = arith.constant 0 : index
    %c0_18 = arith.constant 0 : index
    %28 = vector.load %arg8[%c0_16, %c0_17, %c0_18] : memref<1x16x256xf32, #tpu.memory_space<vmem>>, vector<1x16x256xf32>
    %29 = vector.shape_cast %28 : vector<1x16x256xf32> to vector<16x256xf32>
    %30 = vector.shape_cast %27 : vector<16x256xf32> to vector<1x16x256xf32>
    tpu.vector_store %arg8[%c0_16, %c0_17, %c0_18], %30 {strides = array<i32>} : memref<1x16x256xf32, #tpu.memory_space<vmem>>, vector<1x16x256xf32>,
    return
  }
  func.func @transform_0(%arg0: i32, %arg1: i32) -> (i32, i32, i32) {
    %c0_i32 = arith.constant 0 : i32
    %c0_i32_0 = arith.constant 0 : i32
    return %arg0, %c0_i32, %arg1 : i32, i32, i32
  }
  func.func @transform_1(%arg0: i32, %arg1: i32) -> (i32, i32, i32) {
    %c0_i32 = arith.constant 0 : i32
    %c0_i32_0 = arith.constant 0 : i32
    %c0_i32_1 = arith.constant 0 : i32
    return %arg0, %c0_i32, %c0_i32_0 : i32, i32, i32
  }
  func.func @transform_2(%arg0: i32, %arg1: i32) -> (i32, i32) {
    %c0_i32 = arith.constant 0 : i32
    %c0_i32_0 = arith.constant 0 : i32
    %c0_i32_1 = arith.constant 0 : i32
    return %c0_i32, %c0_i32_0 : i32, i32
  }
  func.func @transform_3(%arg0: i32, %arg1: i32) -> (i32, i32) {
    %c0_i32 = arith.constant 0 : i32
    %c0_i32_0 = arith.constant 0 : i32
    %c0_i32_1 = arith.constant 0 : i32
    return %c0_i32, %c0_i32_0 : i32, i32
  }
  func.func @transform_4(%arg0: i32, %arg1: i32) -> (i32, i32) {
    %c0_i32 = arith.constant 0 : i32
    %c0_i32_0 = arith.constant 0 : i32
    %c0_i32_1 = arith.constant 0 : i32
    return %c0_i32, %c0_i32_0 : i32, i32
  }
  func.func @transform_5(%arg0: i32, %arg1: i32) -> (i32, i32) {
    %c0_i32 = arith.constant 0 : i32
    %c0_i32_0 = arith.constant 0 : i32
    %c0_i32_1 = arith.constant 0 : i32
    return %c0_i32, %c0_i32_0 : i32, i32
  }
  func.func @transform_6(%arg0: i32, %arg1: i32) -> (i32, i32, i32) {
    %c0_i32 = arith.constant 0 : i32
    %c0_i32_0 = arith.constant 0 : i32
    return %arg0, %c0_i32, %arg1 : i32, i32, i32
  }
}

</mosaic_0001>

<bundles_post_ra>
// kernel: tpu_custom_call.1
= control target key start
LH: loop header
LB: loop body
LE: loop exit
PB: predicated region body
PF: predicated region fallthrough
CT: control target
= control target key end

     0   :  { %s995_s0 = inlined_call_operand.hbm [shape: f32[2,16,256], index: 0, kind: input, shape index: {}]   ;;  %s996_s1 = inlined_call_operand.vmem [shape: f32[2,16,1], index: 1, kind: input, shape index: {}]   ;;  %s997_s2 = inlined_call_operand.vmem [shape: f32[2,16], index: 2, kind: input, shape index: {}]   ;;  %s998_s3 = inlined_call_operand.vmem [shape: f32[2,1], index: 3, kind: input, shape index: {}]   ;;  %s999_s4 = inlined_call_operand.vmem [shape: f32[2,1], index: 4, kind: input, shape index: {}]   ;;  %s1000_s5 = inlined_call_operand.<no memory space> [shape: f32[1,1], index: 5, kind: input, shape index: {}]   ;;  %s1001_s6 = inlined_call_operand.hbm [shape: f32[2,16,256], index: 6, kind: output, shape index: {}]  }
   0x1   :  { %v11_v0 = vstv %s1000_s5 }
   0x2   :  { %12 = vst [vmem:[#allocation2] sm:$0x1] %v11_v0 }
   0x3   :  { %13 = vsyncpa [#allocation4], 0 }
   0x4   :  { %15 = vsyncpa [#allocation4 + $0x1], 0 }
   0x5   :  { %16 = vsyncpa [#allocation5], 0 }
   0x6   :  { %18 = vsyncpa [#allocation5 + $0x1], 0  ;;  %s841_s23 = smov 0   ;;  %s843_s24 = smov 0  }
   0x7   :  { %s845_s25 = smov 0   ;;  %s847_s26 = smov 0  }
   0x8   :  { %s849_s27 = smov 0   ;;  %s851_s28 = smov 0  }
   0x9 LB: > { %s582_s5 = sadd.s32 4294967295, %s796_s28   ;;  %s583_s29 = sadd.s32 4294967294, %s796_s28   ;;  %s796_s28 = sphi %s851_s28, %s24_s28   ;;  %s792_s27 = sphi %s849_s27, %s1010_s27   ;;  %s788_s26 = sphi %s847_s26, %s1009_s26   ;;  %s784_s25 = sphi %s845_s25, %s1008_s25   ;;  %s780_s24 = sphi %s843_s24, %s1007_s24   ;;  %s776_s23 = sphi %s841_s23, %s1006_s23  }
   0xa   : > { %s36_s30 = sadd.s32 1, %s792_s27  ;;  %s45_s7 = sadd.s32 1, %s784_s25 }
   0xb   : > { %p38_p0 = scmp.ge.s32.totalorder %s36_s30, 2  ;;  %p52_p1 = scmp.ne.s32.totalorder %s784_s25, %s780_s24 }
   0xc   : > { %p53_p2 = scmp.eq.s32.totalorder %s796_s28, 0  ;;  %p58_p3 = scmp.ne.s32.totalorder %s780_s24, %s776_s23 }
   0xd   : > { %s1012_s30 = smov (%p38_p0, %s36_s30), 0  ;;  %p59_p5 = scmp.eq.s32.totalorder %s582_s5, 0 }
   0xe   : > { %p882_p4 = por %p53_p2, %p52_p1  ;;  %s40_s9 = ssub.s32 %s792_s27, %s1012_s30 }
   0xf   : > { %p194_p6 = scmp.eq.s32.totalorder %s582_s5, 1  ;;  %p43_p7 = scmp.eq.s32.totalorder %s40_s9, 0 }
  0x10   : > { %p888_p8 = por %p59_p5, %p58_p3  ;;  %p200_p10 = scmp.eq.s32.totalorder %s583_s29, 1 }
  0x11   : > { %p892_p9 = por %p194_p6, %p52_p1  ;;  %p585_p12 = scmp.ge.s32.totalorder %s796_s28, 2 }
  0x12   : > { %s897_s12 = scalar_select %p43_p7, %s784_s25, %s45_s7  }
  0x13   : > { %p899_p11 = por %p200_p10, %p58_p3  ;;  %p618_p13 = scmp.lt.s32.totalorder %s796_s28, 2 }
  0x14   : > { %s232_s14 = sand.u32 1, %s784_s25   ;;  %s603_s16 = sshll.u32 %s792_s27, 5 }
  0x15   : > { %s586_s15 = sshll.u32 %s232_s14, 5  ;;  %s243_s19 = scalar_lea.hbm %s995_s0, %s603_s16 }
  0x16   : > { %s236_s20 = scalar_lea.vmem [#allocation3], %s586_s15  ;;  %s244_s22 = sshll.u32 %s243_s19, 4  ;;  %s245_s22 = int_to_ptr.hbm [resolvable:$true] %s244_s22 }
  0x17   : > { %s246_s21 = sshll.u32 %s236_s20, 4  ;;  %p611_p0 = pnand %p618_p13, %p882_p4  ;;  %s247_s21 = int_to_ptr.vmem [resolvable:$true] %s246_s21 }
  0x18   : > { %p589_p1 = scmp.ge.s32.totalorder %s796_s28, 1  ;;  %s233_s5 = scalar_lea.sflag [#allocation4], %s232_s14 }
  0x19   : > { %s798_s29 = smov 256   ;;  %s799_s7 = smov 16  }
  0x1a   : > { %613 = dma.hbm_to_vmem [thread:$0]  (!%p611_p0), %s245_s22, 512, %s247_s21, %s233_s5, %s798_s29, %s798_s29, %s799_s7  }
  0x1b   : > { %p262_p2 = scmp.lt.s32.totalorder %s796_s28, 3 }
  0x1d   : > { %p263_p3 = pnand %p589_p1, %p262_p2 }
  0x1e   : > { %s915_s9 = sand.u32 (!%p263_p3), 1, %s780_s24  }
  0x1f   : > { %266 = sbr.rel (%p263_p3) target bundleno = 228 (0xe4), region = 44  ;;  %s590_s15 = sshll.u32 (!%p263_p3), %s915_s9, 5 }
  0x20   : > { %s269_s16 = scalar_lea.sflag (!%p263_p3), [#allocation4], %s915_s9  ;;  %s272_s8 = scalar_lea.vmem (!%p263_p3), [#allocation3], %s590_s15 }
  0x24   : > { %767 = dma.done.wait (%p888_p8), %s269_s16, 512  }
  0x25   : > { %769 = vsyncadd (%p888_p8), %s269_s16, 4294966784  ;;  %p308_p4 = scmp.lt.s32.totalorder %s788_s26, 1  ;;  %v800_v1 = vmov 0   ;;  %v927_v2 = vld [vmem:[%s272_s8 + $0x10] sm:$0xff]  ;;  %v929_v3 = vld [vmem:[%s272_s8 + $0x18] sm:$0xff]  ;;  %vm325_vm0 = vcmask 130048  }
  0x26   : > { %673 = vset.pattern.permute.xlu0 %v800_v1  ;;  %674 = vset.pattern.permute.xlu1 %v800_v1  ;;  %v319_v4 = vld [vmem:[%s998_s3] sm:$0x3]  ;;  %v938_v6 = vld [vmem:[%s272_s8 + $0x8] sm:$0xff]  ;;  %vm379_vm1 = vcmask 1041408   ;;  %s605_s16 = sshll.u32 %s788_s26, 5 }
  0x27   : > { %s309_s14 = scalar_select %p308_p4, %s788_s26, 1  ;;  %675 = vset.pattern.permute.xlu2 %v800_v1  ;;  %343 = vmatpush.msra.mxu0 %v927_v2  ;;  %v936_v5 = vld [vmem:[%s272_s8] sm:$0xff]  ;;  %v394_v8 = vld [vmem:[#allocation2] sm:$0x1] }
  0x28   : > { %363 = vmatpush.msra.mxu1 %v929_v3  ;;  %v318_v7 = vld [vmem:[%s997_s2] sm:$0x3]  ;;  %322 = vperm.xlu0 %673, %v319_v4   ;;  %s306_s26 = scalar_lea.vmem [#allocation6], %s590_s15  ;;  %s466_s15 = scalar_lea.sflag [#allocation5], %s915_s9 }
  0x29   : > { %s604_s17 = sshll.u32 %s309_s14, 4  ;;  %344 = vmatpush.msra.mxu0 %v936_v5  ;;  %397 = vperm.xlu1 %674, %v394_v8   ;;  %v371_v10 = vld [vmem:[%s999_s4] sm:$0x3]  ;;  %s480_s18 = sshll.u32 %s306_s26, 4  ;;  %s481_s18 = int_to_ptr.vmem [resolvable:$true] %s480_s18 }
  0x2a   : > { %s312_s5 = scalar_lea.vmem %s996_s1, %s604_s17  ;;  %364 = vmatpush.msra.mxu1 %v938_v6  ;;  %594 = vmatmul.msk.f32.vlgmr.msra.gmra.mxu0 %vm325_vm0, %v318_v7  ;;  %s479_s17 = scalar_lea.hbm %s1001_s6, %s605_s16 }
  0x2b   : > { %v446_v9 = vld [vmem:[%s312_s5 + $0x8] sm:$0xff]  ;;  %595 = vmatmul.msk.f32.vlgmr.msra.gmra.mxu1 %vm325_vm0, %v318_v7  ;;  %v445_v11 = vld [vmem:[%s312_s5] sm:$0xff]  ;;  %s482_s19 = sshll.u32 %s479_s17, 4  ;;  %s734_s5 = scalar_lea.hbm %s1001_s6, 64  ;;  %s483_s19 = int_to_ptr.hbm [resolvable:$true] %s482_s19 }
  0x2c   : > { %454 = vperm.xlu2 %675, %v446_v9   ;;  %s728_s10 = sshra.s32 %s483_s19, 4  ;;  %s729_s10 = int_to_ptr.hbm [resolvable:$true] %s728_s10 }
  0x2d   : > { %s730_s20 = scalar_lea.hbm %s729_s10, 32  ;;  %p735_p8 = scmp.lt.s32.totalorder %s729_s10, %s1001_s6 }
  0x2e   : > { %p731_p5 = scmp.ne.s32.totalorder %s729_s10, %s730_s20  ;;  %p736_p10 = scmp.lt.s32.totalorder %s734_s5, %s730_s20 }
  0x30   : > { %374 = vperm.xlu0 %673, %v371_v10   ;;  %p732_p6 = pnand %p731_p5, %p892_p9  ;;  %p737_p13 = por %p736_p10, %p735_p8 }
  0x31   : > { %449 = vperm.xlu1 %674, %v445_v11  }
  0x32   : > { %p733_p7 = pneg %p732_p6 }
  0x34   : > { %p738_p0 = pnand %p737_p13, %p733_p7 }
  0x86   : > { %v455_v1 = vpop.permute.xlu2 %454 }
  0x9a   : > { %v323_v12 = vpop.permute.xlu0 %322 }
  0x9b   : > { %v398_v32 = vpop.permute.xlu1 %397 }
  0x9c   : > { %v400_v35 = vperm.slane %v398_v32, 0 }
  0xa2   : > { %v375_v19 = vpop.permute.xlu0 %374 }
  0xa3   : > { %v450_v9 = vpop.permute.xlu1 %449 }
  0xa7   : > { %v346_v13 = vpop.f32.mrf.mxu0 }
  0xa8   : > { %v366_v14 = vpop.f32.mrf.mxu1  ;;  %v347_v15 = vadd.f32 %v346_v13, %v323_v12 }
  0xa9   : > { %v367_v16 = vadd.f32 %v366_v14, %v323_v12 }
  0xaa   : > { %v369_v17 = vmax.f32 %v347_v15, 0.0 }
  0xab   : > { %v370_v18 = vmax.f32 %v367_v16, 0.0 }
  0xac   : > { %v377_v20 = vmul.f32 %v375_v19, %v369_v17 }
  0xad   : > { %v378_v21 = vmul.f32 %v375_v19, %v370_v18 }
  0xae   : > { %v380_v22 = vsel %vm379_vm1, %v377_v20, 0.0 }
  0xaf   : > { %v387_v23 = vsel %vm379_vm1, %v378_v21, 0.0  ;;  %v381_v24 = vrot.slane %v380_v22, 4 }
  0xb0   : > { %v388_v25 = vrot.slane %v387_v23, 4 }
  0xb1   : > { %v382_v26 = vadd.f32 %v381_v24, %v380_v22 }
  0xb2   : > { %v389_v27 = vadd.f32 %v388_v25, %v387_v23 }
  0xb3   : > { %v383_v28 = vrot.slane %v382_v26, 2 }
  0xb4   : > { %v390_v29 = vrot.slane %v389_v27, 2 }
  0xb5   : > { %v384_v30 = vadd.f32 %v383_v28, %v382_v26 }
  0xb6   : > { %v391_v31 = vadd.f32 %v390_v29, %v389_v27 }
  0xb7   : > { %v385_v33 = vrot.slane %v384_v30, 1 }
  0xb8   : > { %v392_v34 = vrot.slane %v391_v31, 1 }
  0xb9   : > { %v386_v36 = vadd.f32 %v385_v33, %v384_v30 }
  0xba   : > { %v393_v37 = vadd.f32 %v392_v34, %v391_v31 }
  0xbb   : > { %v401_v38 = vadd.f32 %v400_v35, %v386_v36 }
  0xbc   : > { %v402_v39 = vadd.f32 %v400_v35, %v393_v37 }
  0xbd   : > { %v596_v40 = vmul.f32 -1.442695, %v401_v38 }
  0xbe   : > { %v597_v41 = vmul.f32 -1.442695, %v402_v39 }
  0xbf   : > { %676 = vpow2.f32 %v596_v40 }
  0xc0   : > { %678 = vpow2.f32 %v597_v41 }
  0xc5   : > { %v677_v42 = vpop.eup %676 }
  0xc6   : > { %v679_v43 = vpop.eup %678  ;;  %v409_v44 = vadd.f32 1.0, %v677_v42 }
  0xc7   : > { %v410_v45 = vadd.f32 1.0, %v679_v43 }
  0xc8   : > { %680 = vrcp.f32 %v409_v44  ;;  %v422_v51 = vand.u32 2147483648, %v409_v44  ;;  %v420_v54 = vand.u32 2147483647, %v409_v44  ;;  %vm416_vm4 = vweird.f32 %v409_v44 }
  0xc9   : > { %682 = vrcp.f32 %v410_v45  ;;  %v437_v55 = vand.u32 2147483648, %v410_v45  ;;  %v435_v57 = vand.u32 2147483647, %v410_v45  ;;  %vm431_vm6 = vweird.f32 %v410_v45 }
  0xca   : > { %v423_v59 = vor.u32 1.1754944e-38, %v422_v51  ;;  %vm421_vm7 = vcmp.eq.f32.partialorder %v420_v54, 8.507059e+37 }
  0xcb   : > { %v438_v62 = vor.u32 1.1754944e-38, %v437_v55  ;;  %vm436_vm9 = vcmp.eq.f32.partialorder %v435_v57, 8.507059e+37 }
  0xce   : > { %v681_v46 = vpop.eup %680 }
  0xcf   : > { %v683_v47 = vpop.eup %682  ;;  %v412_v48 = vmul.f32 %v681_v46, %v409_v44  ;;  %vm417_vm2 = vweird.f32 %v681_v46 }
  0xd0   : > { %v427_v49 = vmul.f32 %v683_v47, %v410_v45  ;;  %vm432_vm3 = vweird.f32 %v683_v47  ;;  %vm418_vm5 = vmor %vm416_vm4, %vm417_vm2 }
  0xd1   : > { %v413_v50 = vsub.f32 1.0, %v412_v48  ;;  %vm433_vm8 = vmor %vm431_vm6, %vm432_vm3 }
  0xd2   : > { %v428_v52 = vsub.f32 1.0, %v427_v49 }
  0xd3   : > { %v414_v53 = vmul.f32 %v681_v46, %v413_v50 }
  0xd4   : > { %v429_v56 = vmul.f32 %v683_v47, %v428_v52 }
  0xd5   : > { %v415_v58 = vadd.f32 %v681_v46, %v414_v53 }
  0xd6   : > { %v430_v60 = vadd.f32 %v683_v47, %v429_v56 }
  0xd7   : > { %v419_v61 = vsel %vm418_vm5, %v681_v46, %v415_v58 }
  0xd8   : > { %v424_v63 = vsel %vm421_vm7, %v423_v59, %v419_v61  ;;  %v434_v0 = vsel %vm433_vm8, %v683_v47, %v430_v60 }
  0xd9   : > { %v439_v4 = vsel %vm436_vm9, %v438_v62, %v434_v0  ;;  %v441_v7 = vmul.f32 %v424_v63, %v936_v5  ;;  %v443_v8 = vmul.f32 %v424_v63, %v927_v2 }
  0xda   : > { %v442_v10 = vmul.f32 %v439_v4, %v938_v6  ;;  %v444_v11 = vmul.f32 %v439_v4, %v929_v3 }
  0xdb   : > { %v457_v12 = vmul.f32 %v450_v9, %v441_v7  ;;  %v459_v13 = vmul.f32 %v455_v1, %v443_v8 }
  0xdc   : > { %v458_v14 = vmul.f32 %v450_v9, %v442_v10  ;;  %v460_v15 = vmul.f32 %v455_v1, %v444_v11 }
  0xdd   : > { %461 = vst [vmem:[%s306_s26] sm:$0xff] %v457_v12 }
  0xde   : > { %462 = vst [vmem:[%s306_s26 + $0x8] sm:$0xff] %v458_v14 }
  0xdf   : > { %463 = vst [vmem:[%s306_s26 + $0x10] sm:$0xff] %v459_v13 }
  0xe0   : > { %464 = vst [vmem:[%s306_s26 + $0x18] sm:$0xff] %v460_v15 }
  0xe1   : > { %741 = shalt.err (!%p738_p0)
}
  0xe2   : > { %s801_s9 = smov 256   ;;  %s802_s16 = smov 16  }
  0xe3   : > { %608 = dma.vmem_to_hbm [thread:$0]  (%p892_p9), %s481_s18, 512, %s483_s19, %s466_s15, %s801_s9, %s801_s9, %s802_s16  }
  0xe4 PF: > { %s497_s8 = sand.u32 1, %s776_s23   ;;  %p615_p1 = pnand %p585_p12, %p899_p11 }
  0xe5   : > { %s498_s14 = scalar_lea.sflag [#allocation5], %s497_s8 }
  0xe6   : > { %p616_p2 = pneg %p615_p1 }
  0xe8   : > { %771 = dma.done.wait (%p616_p2), %s498_s14, 512  }
  0xe9   : > { %773 = vsyncadd (%p616_p2), %s498_s14, 4294966784  ;;  %s24_s28 = sadd.s32 1, %s796_s28   ;;  %s1006_s23 = smov %s780_s24 }
  0xea   : > { %p21_p3 = scmp.ge.s32.totalorder %s24_s28, 4   ;;  %s1007_s24 = smov %s784_s25 }
  0xeb   : > { %s1008_s25 = smov %s897_s12  ;;  %s1009_s26 = smov %s792_s27 }
  0xec   : > { %s1010_s27 = smov %s1012_s30  ;;  %23 = sbr.rel (!%p21_p3) target bundleno = 9 (0x9), region = 92 }
  0xf1   :  { %504 = vsyncpa [#allocation4], 1 }
  0xf2   :  { %506 = vsyncpa [#allocation4 + $0x1], 1 }
  0xf3   :  { %507 = vsyncpa [#allocation5], 1 }
  0xf4   :  { %509 = vsyncpa [#allocation5 + $0x1], 1 }

</bundles_post_ra>
